<compile_context>
chip_gen: v5e
topology: v5e:2x2
jax: 0.10.0
libtpu: 0.0.40
codegen_flags: <defaults>
</compile_context>

<pallas_src>
import functools

import jax
import jax.numpy as jnp
from jax.experimental import pallas as pl
from jax.experimental.pallas import tpu as pltpu


# ----------------------------- Pallas kernel ------------------------------


def _nn_pw_zimc_kernel(
    z_ref, imc_ref,                 # (TB, n_z) f32, (TB, 128) f32
    wz1_ref, w1a_ref, wzb_ref,      # bf16 weights (in, out)
    w2_ref, wh_ref,                 # bf16 weights
    b_ref, bh_ref,                  # (3, 64) f32, (1, HP) f32
    out_ref,                        # (TB, HP) f32 : [mean | logvar | zero-pad]
):
    f32 = jnp.float32
    bf16 = jnp.bfloat16

    z = z_ref[...].astype(bf16)
    imc = imc_ref[...].astype(bf16)

    bz1 = b_ref[0:1, :]   # (1, 64) f32
    b1p = b_ref[1:2, :]   # fc1 bias with fc_z2 bias folded in
    b2 = b_ref[2:3, :]

    # z_x = relu(fc_z1(z))
    zx = jnp.dot(z, wz1_ref[...], preferred_element_type=f32) + bz1
    zx = jnp.maximum(zx, 0.0).astype(bf16)

    # x = relu(fc1(cat(im_c, fc_z2(z_x))))   with fc_z2 folded into Wzb / b1p:
    #   = relu(im_c @ W1a + z_x @ (wz2 @ W1b) + (b1 + bz2 @ W1b))
    x = (jnp.dot(imc, w1a_ref[...], preferred_element_type=f32)
         + jnp.dot(zx, wzb_ref[...], preferred_element_type=f32)
         + b1p)
    x = jnp.maximum(x, 0.0).astype(bf16)

    # x = relu(fc2(x))
    x = jnp.dot(x, w2_ref[...], preferred_element_type=f32) + b2
    x = jnp.maximum(x, 0.0).astype(bf16)

    # fused [mean | logvar] head, lane-padded to a multiple of 128 columns
    out_ref[...] = (jnp.dot(x, wh_ref[...], preferred_element_type=f32)
                    + bh_ref[...]).astype(out_ref.dtype)


# ------------------------------ JAX wrapper --------------------------------


def _round_up(x, m):
    return ((x + m - 1) // m) * m


def init_params(key, n_z, dim_w, n_k, dtype=jnp.float32):
    """Deterministic synthetic parameters (shapes match the torch module)."""
    def linear(key, fan_in, fan_out):
        kw, kb = jax.random.split(key)
        bound = 1.0 / jnp.sqrt(fan_in)
        # stored as (in, out) -> y = x @ W + b
        w = jax.random.uniform(kw, (fan_in, fan_out), dtype, -bound, bound)
        b = jax.random.uniform(kb, (1, fan_out), dtype, -bound, bound)
        return w, b

    keys = jax.random.split(key, 6)
    out_dim = dim_w * n_k
    p = {}
    p["wz1"], p["bz1"] = linear(keys[0], n_z, 64)
    p["wz2"], p["bz2"] = linear(keys[1], 64, 64)
    w1, p["b1"] = linear(keys[2], 3 * 64, 64)
    p["w1a"], p["w1b"] = w1[:128, :], w1[128:, :]   # split for the concat
    p["w2"], p["b2"] = linear(keys[3], 64, 64)
    p["wm"], p["bm"] = linear(keys[4], 64, out_dim)
    p["wl"], p["bl"] = linear(keys[5], 64, out_dim)
    return p


def _prep_fused_params(params, out_dim):
    """Fold fc_z2 into fc1, fuse heads, cast weights to bf16 (f32 biases)."""
    hp = max(128, _round_up(2 * out_dim, 128))          # lane-dense head width

    wzb = params["wz2"] @ params["w1b"]                  # (64, 64)
    b1p = params["b1"] + params["bz2"] @ params["w1b"]   # (1, 64)

    wh = jnp.zeros((64, hp), jnp.float32)
    wh = wh.at[:, :out_dim].set(params["wm"])
    wh = wh.at[:, out_dim:2 * out_dim].set(params["wl"])
    bh = jnp.zeros((1, hp), jnp.float32)
    bh = bh.at[:, :out_dim].set(params["bm"])
    bh = bh.at[:, out_dim:2 * out_dim].set(params["bl"])

    b_all = jnp.concatenate(
        [params["bz1"], b1p, params["b2"]], axis=0).astype(jnp.float32)  # (3, 64)

    bf16 = jnp.bfloat16
    return {
        "wz1": params["wz1"].astype(bf16),
        "w1a": params["w1a"].astype(bf16),
        "wzb": wzb.astype(bf16),
        "w2": params["w2"].astype(bf16),
        "wh": wh.astype(bf16),
        "b_all": b_all,
        "bh": bh,
    }, hp


@functools.partial(jax.jit, static_argnames=("n_k", "dim_w"))
def nn_pw_zimc_forward(z, im_c, params, *, n_k, dim_w):
    n_batch, n_z = z.shape
    im_dim = im_c.shape[1]
    # fc1 expects cat(im_c, z_x) with 3*64 inputs and z_x is 64 wide.
    assert im_dim == 128, "im_c must have 128 features (3*64 - 64)"
    out_dim = n_k * dim_w

    fused, hp = _prep_fused_params(params, out_dim)

    # --- batch tiling: single block for small B, 128-row tiles otherwise ---
    tb = 128
    if n_batch <= tb:
        b_pad = _round_up(max(n_batch, 8), 8)
        tb = b_pad
    else:
        b_pad = _round_up(n_batch, tb)
    if b_pad != n_batch:
        z = jnp.pad(z, ((0, b_pad - n_batch), (0, 0)))
        im_c = jnp.pad(im_c, ((0, b_pad - n_batch), (0, 0)))
    grid = (b_pad // tb,)

    def batch_spec(feat):
        return pl.BlockSpec((tb, feat), lambda i: (i, 0))

    def resident(shape):
        return pl.BlockSpec(shape, lambda i: (0, 0))   # stays in VMEM across steps

    flops = 2 * b_pad * (n_z * 64 + im_dim * 64 + 64 * 64 + 64 * 64 + 64 * hp)
    bytes_accessed = (
        b_pad * (n_z + im_dim) * 4                       # activations in (f32)
        + (n_z * 64 + im_dim * 64 + 64 * 64 + 64 * 64 + 64 * hp) * 2  # bf16 weights
        + (3 * 64 + hp) * 4                              # biases
        + b_pad * hp * 4                                 # output
    )

    out = pl.pallas_call(
        _nn_pw_zimc_kernel,
        out_shape=jax.ShapeDtypeStruct((b_pad, hp), jnp.float32),
        grid=grid,
        in_specs=[
            batch_spec(n_z),
            batch_spec(im_dim),
            resident((n_z, 64)),
            resident((im_dim, 64)),
            resident((64, 64)),
            resident((64, 64)),
            resident((64, hp)),
            resident((3, 64)),
            resident((1, hp)),
        ],
        out_specs=batch_spec(hp),
        compiler_params=pltpu.CompilerParams(
            dimension_semantics=("parallel",)),
        cost_estimate=pl.CostEstimate(
            flops=flops, transcendentals=0, bytes_accessed=bytes_accessed),
    )(z, im_c, fused["wz1"], fused["w1a"], fused["wzb"], fused["w2"],
      fused["wh"], fused["b_all"], fused["bh"])

    mean = out[:n_batch, :out_dim].reshape(n_batch, n_k, dim_w)
    logvar = out[:n_batch, out_dim:2 * out_dim].reshape(n_batch, n_k, dim_w)
    return mean, logvar


# --------------------------- reference (pure JAX) ---------------------------


def reference_forward(z, im_c, params, n_k, dim_w):
    zx = jnp.maximum(z @ params["wz1"] + params["bz1"], 0.0)
    zx = zx @ params["wz2"] + params["bz2"]
    x = jnp.concatenate([im_c, zx], axis=1)
    w1 = jnp.concatenate([params["w1a"], params["w1b"]], axis=0)
    x = jnp.maximum(x @ w1 + params["b1"], 0.0)
    x = jnp.maximum(x @ params["w2"] + params["b2"], 0.0)
    mean = (x @ params["wm"] + params["bm"]).reshape(z.shape[0], n_k, dim_w)
    logvar = (x @ params["wl"] + params["bl"]).reshape(z.shape[0], n_k, dim_w)
    return mean, logvar


# ---------------------------------- main ------------------------------------


if __name__ == "__main__":
    # module hyper-params (small, consistent with the forward pass)
    n_z, dim_w, n_k = 8, 4, 5
    im_c_dim = 3 * 64 - 64  # = 128, required by fc1's cat((im_c, z_x), 1)

    key = jax.random.PRNGKey(0)
    kp, kz, kc, kz2, kc2 = jax.random.split(key, 5)
    params = init_params(kp, n_z, dim_w, n_k)

    # bf16 weights (f32 accumulation) => compare with a loose-ish tolerance
    TOL = dict(atol=3e-2, rtol=3e-2)

    # --- small demo batch (single grid step) ---
    batch = 2
    z = jax.random.normal(kz, (batch, n_z), jnp.float32)
    im_c = jax.random.normal(kc, (batch, im_c_dim), jnp.float32)

    mean, logvar = nn_pw_zimc_forward(z, im_c, params, n_k=n_k, dim_w=dim_w)
    jax.block_until_ready((mean, logvar))

    ref_mean, ref_logvar = reference_forward(z, im_c, params, n_k, dim_w)
    assert mean.shape == (batch, n_k, dim_w)
    assert logvar.shape == (batch, n_k, dim_w)
    assert jnp.allclose(mean, ref_mean, **TOL)
    assert jnp.allclose(logvar, ref_logvar, **TOL)

    # --- larger batch: exercises the multi-step batch grid + row padding ---
    batch2 = 200
    z2 = jax.random.normal(kz2, (batch2, n_z), jnp.float32)
    im_c2 = jax.random.normal(kc2, (batch2, im_c_dim), jnp.float32)

    mean2, logvar2 = nn_pw_zimc_forward(z2, im_c2, params, n_k=n_k, dim_w=dim_w)
    jax.block_until_ready((mean2, logvar2))

    ref_mean2, ref_logvar2 = reference_forward(z2, im_c2, params, n_k, dim_w)
    assert mean2.shape == (batch2, n_k, dim_w)
    assert jnp.allclose(mean2, ref_mean2, **TOL)
    assert jnp.allclose(logvar2, ref_logvar2, **TOL)

    print("KERNEL_OK")
</pallas_src>

<mosaic_0001>
module attributes {stable_mosaic.version = 11 : i64} {
  func.func @_nn_pw_zimc_kernel(%arg0: i32, %arg1: memref<8x8xf32, #tpu.memory_space<vmem>>, %arg2: memref<8x128xf32, #tpu.memory_space<vmem>>, %arg3: memref<8x64xbf16, #tpu.memory_space<vmem>>, %arg4: memref<128x64xbf16, #tpu.memory_space<vmem>>, %arg5: memref<64x64xbf16, #tpu.memory_space<vmem>>, %arg6: memref<64x64xbf16, #tpu.memory_space<vmem>>, %arg7: memref<64x128xbf16, #tpu.memory_space<vmem>>, %arg8: memref<3x64xf32, #tpu.memory_space<vmem>>, %arg9: memref<1x128xf32, #tpu.memory_space<vmem>>, %arg10: memref<8x128xf32, #tpu.memory_space<vmem>>) attributes {dimension_semantics = [#tpu.dimension_semantics<parallel>], iteration_bounds = array<i64: 1>, scalar_prefetch = 0 : i64, scratch_operands = 0 : i64, tpu.core_type = #tpu.core_type<tc>, window_params = [{transform_indices = @transform_0, window_bounds = array<i64: 8, 8>}, {transform_indices = @transform_1, window_bounds = array<i64: 8, 128>}, {pipeline_mode = #tpu.pipeline_mode<synchronous>, transform_indices = @transform_2, window_bounds = array<i64: 8, 64>}, {pipeline_mode = #tpu.pipeline_mode<synchronous>, transform_indices = @transform_3, window_bounds = array<i64: 128, 64>}, {pipeline_mode = #tpu.pipeline_mode<synchronous>, transform_indices = @transform_4, window_bounds = array<i64: 64, 64>}, {pipeline_mode = #tpu.pipeline_mode<synchronous>, transform_indices = @transform_5, window_bounds = array<i64: 64, 64>}, {pipeline_mode = #tpu.pipeline_mode<synchronous>, transform_indices = @transform_6, window_bounds = array<i64: 64, 128>}, {pipeline_mode = #tpu.pipeline_mode<synchronous>, transform_indices = @transform_7, window_bounds = array<i64: 3, 64>}, {pipeline_mode = #tpu.pipeline_mode<synchronous>, transform_indices = @transform_8, window_bounds = array<i64: 1, 128>}, {transform_indices = @transform_9, window_bounds = array<i64: 8, 128>}]} {
    %c0 = arith.constant 0 : index
    %c0_0 = arith.constant 0 : index
    %0 = vector.load %arg1[%c0, %c0_0] : memref<8x8xf32, #tpu.memory_space<vmem>>, vector<8x8xf32>
    %1 = arith.truncf %0 : vector<8x8xf32> to vector<8x8xbf16>
    %c0_1 = arith.constant 0 : index
    %c0_2 = arith.constant 0 : index
    %2 = vector.load %arg2[%c0_1, %c0_2] : memref<8x128xf32, #tpu.memory_space<vmem>>, vector<8x128xf32>
    %3 = arith.truncf %2 : vector<8x128xf32> to vector<8x128xbf16>
    %c0_3 = arith.constant 0 : index
    %c0_4 = arith.constant 0 : index
    %4 = vector.load %arg8[%c0_3, %c0_4] : memref<3x64xf32, #tpu.memory_space<vmem>>, vector<1x64xf32>
    %c1 = arith.constant 1 : index
    %c0_5 = arith.constant 0 : index
    %5 = vector.load %arg8[%c1, %c0_5] : memref<3x64xf32, #tpu.memory_space<vmem>>, vector<1x64xf32>
    %c2 = arith.constant 2 : index
    %c0_6 = arith.constant 0 : index
    %6 = vector.load %arg8[%c2, %c0_6] : memref<3x64xf32, #tpu.memory_space<vmem>>, vector<1x64xf32>
    %c0_7 = arith.constant 0 : index
    %c0_8 = arith.constant 0 : index
    %7 = vector.load %arg3[%c0_7, %c0_8] : memref<8x64xbf16, #tpu.memory_space<vmem>>, vector<8x64xbf16>
    %cst = arith.constant dense<0.000000e+00> : vector<8x64xf32>
    %8 = tpu.matmul %1, %7, %cst {dimension_numbers = #tpu.dot_dimension_numbers<[1], [0], [0], [1], [0, 0, 1, 1], [], []>} : vector<8x8xbf16>, vector<8x64xbf16>, vector<8x64xf32> -> vector<8x64xf32>
    %9 = vector.broadcast %4 : vector<1x64xf32> to vector<8x64xf32>
    %10 = arith.addf %8, %9 : vector<8x64xf32>
    %cst_9 = arith.constant 0.000000e+00 : f32
    %11 = vector.broadcast %cst_9 : f32 to vector<8x64xf32>
    %12 = arith.maximumf %10, %11 : vector<8x64xf32>
    %13 = arith.truncf %12 : vector<8x64xf32> to vector<8x64xbf16>
    %c0_10 = arith.constant 0 : index
    %c0_11 = arith.constant 0 : index
    %14 = vector.load %arg4[%c0_10, %c0_11] : memref<128x64xbf16, #tpu.memory_space<vmem>>, vector<128x64xbf16>
    %cst_12 = arith.constant dense<0.000000e+00> : vector<8x64xf32>
    %15 = tpu.matmul %3, %14, %cst_12 {dimension_numbers = #tpu.dot_dimension_numbers<[1], [0], [0], [1], [0, 0, 1, 1], [], []>} : vector<8x128xbf16>, vector<128x64xbf16>, vector<8x64xf32> -> vector<8x64xf32>
    %c0_13 = arith.constant 0 : index
    %c0_14 = arith.constant 0 : index
    %16 = vector.load %arg5[%c0_13, %c0_14] : memref<64x64xbf16, #tpu.memory_space<vmem>>, vector<64x64xbf16>
    %cst_15 = arith.constant dense<0.000000e+00> : vector<8x64xf32>
    %17 = tpu.matmul %13, %16, %cst_15 {dimension_numbers = #tpu.dot_dimension_numbers<[1], [0], [0], [1], [0, 0, 1, 1], [], []>} : vector<8x64xbf16>, vector<64x64xbf16>, vector<8x64xf32> -> vector<8x64xf32>
    %18 = arith.addf %15, %17 : vector<8x64xf32>
    %19 = vector.broadcast %5 : vector<1x64xf32> to vector<8x64xf32>
    %20 = arith.addf %18, %19 : vector<8x64xf32>
    %cst_16 = arith.constant 0.000000e+00 : f32
    %21 = vector.broadcast %cst_16 : f32 to vector<8x64xf32>
    %22 = arith.maximumf %20, %21 : vector<8x64xf32>
    %23 = arith.truncf %22 : vector<8x64xf32> to vector<8x64xbf16>
    %c0_17 = arith.constant 0 : index
    %c0_18 = arith.constant 0 : index
    %24 = vector.load %arg6[%c0_17, %c0_18] : memref<64x64xbf16, #tpu.memory_space<vmem>>, vector<64x64xbf16>
    %cst_19 = arith.constant dense<0.000000e+00> : vector<8x64xf32>
    %25 = tpu.matmul %23, %24, %cst_19 {dimension_numbers = #tpu.dot_dimension_numbers<[1], [0], [0], [1], [0, 0, 1, 1], [], []>} : vector<8x64xbf16>, vector<64x64xbf16>, vector<8x64xf32> -> vector<8x64xf32>
    %26 = vector.broadcast %6 : vector<1x64xf32> to vector<8x64xf32>
    %27 = arith.addf %25, %26 : vector<8x64xf32>
    %cst_20 = arith.constant 0.000000e+00 : f32
    %28 = vector.broadcast %cst_20 : f32 to vector<8x64xf32>
    %29 = arith.maximumf %27, %28 : vector<8x64xf32>
    %30 = arith.truncf %29 : vector<8x64xf32> to vector<8x64xbf16>
    %c0_21 = arith.constant 0 : index
    %c0_22 = arith.constant 0 : index
    %31 = vector.load %arg7[%c0_21, %c0_22] : memref<64x128xbf16, #tpu.memory_space<vmem>>, vector<64x128xbf16>
    %cst_23 = arith.constant dense<0.000000e+00> : vector<8x128xf32>
    %32 = tpu.matmul %30, %31, %cst_23 {dimension_numbers = #tpu.dot_dimension_numbers<[1], [0], [0], [1], [0, 0, 1, 1], [], []>} : vector<8x64xbf16>, vector<64x128xbf16>, vector<8x128xf32> -> vector<8x128xf32>
    %c0_24 = arith.constant 0 : index
    %c0_25 = arith.constant 0 : index
    %33 = vector.load %arg9[%c0_24, %c0_25] : memref<1x128xf32, #tpu.memory_space<vmem>>, vector<1x128xf32>
    %34 = vector.broadcast %33 : vector<1x128xf32> to vector<8x128xf32>
    %35 = arith.addf %32, %34 : vector<8x128xf32>
    %c0_26 = arith.constant 0 : index
    %c0_27 = arith.constant 0 : index
    %36 = vector.load %arg10[%c0_26, %c0_27] : memref<8x128xf32, #tpu.memory_space<vmem>>, vector<8x128xf32>
    tpu.vector_store %arg10[%c0_26, %c0_27], %35 {strides = array<i32>} : memref<8x128xf32, #tpu.memory_space<vmem>>, vector<8x128xf32>,
    return
  }
  func.func @transform_0(%arg0: i32) -> (i32, i32) {
    %c0_i32 = arith.constant 0 : i32
    %c0_i32_0 = arith.constant 0 : i32
    return %arg0, %c0_i32 : i32, i32
  }
  func.func @transform_1(%arg0: i32) -> (i32, i32) {
    %c0_i32 = arith.constant 0 : i32
    %c0_i32_0 = arith.constant 0 : i32
    return %arg0, %c0_i32 : i32, i32
  }
  func.func @transform_2(%arg0: i32) -> (i32, i32) {
    %c0_i32 = arith.constant 0 : i32
    %c0_i32_0 = arith.constant 0 : i32
    %c0_i32_1 = arith.constant 0 : i32
    return %c0_i32, %c0_i32_0 : i32, i32
  }
  func.func @transform_3(%arg0: i32) -> (i32, i32) {
    %c0_i32 = arith.constant 0 : i32
    %c0_i32_0 = arith.constant 0 : i32
    %c0_i32_1 = arith.constant 0 : i32
    return %c0_i32, %c0_i32_0 : i32, i32
  }
  func.func @transform_4(%arg0: i32) -> (i32, i32) {
    %c0_i32 = arith.constant 0 : i32
    %c0_i32_0 = arith.constant 0 : i32
    %c0_i32_1 = arith.constant 0 : i32
    return %c0_i32, %c0_i32_0 : i32, i32
  }
  func.func @transform_5(%arg0: i32) -> (i32, i32) {
    %c0_i32 = arith.constant 0 : i32
    %c0_i32_0 = arith.constant 0 : i32
    %c0_i32_1 = arith.constant 0 : i32
    return %c0_i32, %c0_i32_0 : i32, i32
  }
  func.func @transform_6(%arg0: i32) -> (i32, i32) {
    %c0_i32 = arith.constant 0 : i32
    %c0_i32_0 = arith.constant 0 : i32
    %c0_i32_1 = arith.constant 0 : i32
    return %c0_i32, %c0_i32_0 : i32, i32
  }
  func.func @transform_7(%arg0: i32) -> (i32, i32) {
    %c0_i32 = arith.constant 0 : i32
    %c0_i32_0 = arith.constant 0 : i32
    %c0_i32_1 = arith.constant 0 : i32
    return %c0_i32, %c0_i32_0 : i32, i32
  }
  func.func @transform_8(%arg0: i32) -> (i32, i32) {
    %c0_i32 = arith.constant 0 : i32
    %c0_i32_0 = arith.constant 0 : i32
    %c0_i32_1 = arith.constant 0 : i32
    return %c0_i32, %c0_i32_0 : i32, i32
  }
  func.func @transform_9(%arg0: i32) -> (i32, i32) {
    %c0_i32 = arith.constant 0 : i32
    %c0_i32_0 = arith.constant 0 : i32
    return %arg0, %c0_i32 : i32, i32
  }
}

</mosaic_0001>

<bundles_post_ra>
// kernel: nn_pw_zimc_forward.1
= control target key start
LH: loop header
LB: loop body
LE: loop exit
PB: predicated region body
PF: predicated region fallthrough
CT: control target
= control target key end

     0   :  { %vm46_vm0 = vcmask 1043456   ;;  %vm42_vm1 = vcmask 64512   ;;  %vm113_vm2 = vcmask 523264   ;;  %s548_s2 = inlined_call_operand.vmem [shape: bf16[8,64], index: 2, kind: input, shape index: {}]   ;;  %s549_s0 = inlined_call_operand.vmem [shape: f32[8,8], index: 0, kind: input, shape index: {}]   ;;  %s550_s3 = inlined_call_operand.vmem [shape: bf16[128,64], index: 3, kind: input, shape index: {}]   ;;  %s551_s4 = inlined_call_operand.vmem [shape: bf16[64,64], index: 4, kind: input, shape index: {}]   ;;  %s552_s7 = inlined_call_operand.vmem [shape: f32[3,64], index: 7, kind: input, shape index: {}]   ;;  %s553_s1 = inlined_call_operand.vmem [shape: f32[8,128], index: 1, kind: input, shape index: {}]   ;;  %s554_s5 = inlined_call_operand.vmem [shape: bf16[64,64], index: 5, kind: input, shape index: {}]   ;;  %s555_s6 = inlined_call_operand.vmem [shape: bf16[64,128], index: 6, kind: input, shape index: {}]   ;;  %s556_s8 = inlined_call_operand.vmem [shape: f32[1,128], index: 8, kind: input, shape index: {}]   ;;  %s557_s9 = inlined_call_operand.vmem [shape: f32[8,128], index: 9, kind: output, shape index: {}]  }
   0x1   :  { %v40_v0 = vld [vmem:[%s548_s2] sm:$0xf]  ;;  %v394_v2 = vld [vmem:[%s550_s3 + $0x38] sm:$0xff]  ;;  %v393_v5 = vld [vmem:[%s550_s3 + $0x30] sm:$0xff] }
   0x2   :  { %v33_v1 = vld [vmem:[%s549_s0] sm:$0xff]  ;;  %v48_v3 = vsel %vm46_vm0, %v40_v0, 0  ;;  %178 = vmatpush.bf16.msra.mxu2 %v394_v2  ;;  %v398_v6 = vld [vmem:[%s551_s4 + $0x18] sm:$0xff]  ;;  %v397_v7 = vld [vmem:[%s551_s4 + $0x10] sm:$0xff] }
   0x3   :  { %v34_v4 = vpack.c.bf16 %v33_v1, %v33_v1  ;;  %57 = vmatpush.bf16.msra.mxu0 %v48_v3  ;;  %121 = vmatpush.bf16.msra.mxu1 %v398_v6  ;;  %v392_v8 = vld [vmem:[%s550_s3 + $0x28] sm:$0xff]  ;;  %v391_v9 = vld [vmem:[%s550_s3 + $0x20] sm:$0xff]  ;;  %v390_v10 = vld [vmem:[%s550_s3 + $0x18] sm:$0xff] }
   0x4   :  { %v389_v11 = vld [vmem:[%s550_s3 + $0x10] sm:$0xff]  ;;  %v388_v12 = vld [vmem:[%s550_s3 + $0x8] sm:$0xff]  ;;  %v387_v13 = vld [vmem:[%s550_s3] sm:$0xff] }
   0x5   :  { %v35_v14 = vld [vmem:[%s553_s1] sm:$0xff]  ;;  %v396_v16 = vld [vmem:[%s551_s4 + $0x8] sm:$0xff]  ;;  %v402_v21 = vld [vmem:[%s554_s5 + $0x18] sm:$0xff] }
   0x6   :  { %303 = vmatmul.msk.bf16.vlgmr.msra.gmra.mxu0 %vm42_vm1, %v34_v4  ;;  %179 = vmatpush.bf16.msra.mxu2 %v393_v5  ;;  %v36_v15 = vpack.c.bf16 %v35_v14, %v35_v14  ;;  %v395_v17 = vld [vmem:[%s551_s4] sm:$0xff]  ;;  %v401_v23 = vld [vmem:[%s554_s5 + $0x10] sm:$0xff]  ;;  %v400_v28 = vld [vmem:[%s554_s5 + $0x8] sm:$0xff] }
   0x7   :  { %122 = vmatpush.bf16.msra.mxu1 %v397_v7  ;;  %v407_v18 = vld [vmem:[%s552_s7] ss:$0 sm:$0xff]  ;;  %235 = vmatpush.bf16.msra.mxu3 %v402_v21  ;;  %v406_v30 = vld [vmem:[%s555_s6 + $0x18] sm:$0xff]  ;;  %v405_v31 = vld [vmem:[%s555_s6 + $0x10] sm:$0xff] }
   0x8   :  { %v399_v29 = vld [vmem:[%s554_s5] sm:$0xff]  ;;  %289 = vmatpush.bf16.msrb.mxu0 %v406_v30  ;;  %v404_v32 = vld [vmem:[%s555_s6 + $0x8] sm:$0xff] }
   0x9   :  { %v408_v33 = vld [vmem:[%s552_s7 + $0x1] ss:$0 sm:$0xff]  ;;  %v409_v41 = vld [vmem:[%s552_s7 + $0x2] ss:$0 sm:$0xff]  ;;  %v410_v47 = vld [vmem:[%s556_s8] ss:$0 sm:$0xff] }
   0xa   :  { %180 = vmatpush.bf16.msra.mxu2 %v392_v8  ;;  %v403_v40 = vld [vmem:[%s555_s6] sm:$0xff] }
   0xb   :  { %123 = vmatpush.bf16.msra.mxu1 %v396_v16  ;;  %236 = vmatpush.bf16.msra.mxu3 %v401_v23 }
   0xc   :  { %290 = vmatpush.bf16.msrb.mxu0 %v405_v31 }
   0xe   :  { %181 = vmatpush.bf16.msra.mxu2 %v391_v9 }
   0xf   :  { %124 = vmatpush.bf16.msra.mxu1 %v395_v17  ;;  %237 = vmatpush.bf16.msra.mxu3 %v400_v28 }
  0x10   :  { %291 = vmatpush.bf16.msrb.mxu0 %v404_v32 }
  0x12   :  { %182 = vmatpush.bf16.msra.mxu2 %v390_v10 }
  0x13   :  { %238 = vmatpush.bf16.msra.mxu3 %v399_v29 }
  0x14   :  { %292 = vmatpush.bf16.msrb.mxu0 %v403_v40 }
  0x16   :  { %183 = vmatpush.bf16.msra.mxu2 %v389_v11 }
  0x1a   :  { %184 = vmatpush.bf16.msra.mxu2 %v388_v12 }
  0x1e   :  { %185 = vmatpush.bf16.msra.mxu2 %v387_v13 }
  0x21   :  { %186 = vmatmul.bf16.vlgmr.msra.gmra.mxu2 %v36_v15 }
  0x83   :  { %v59_v19 = vpop.f32.mrf.mxu0 }
  0x84   :  { %v60_v20 = vadd.f32 %v407_v18, %v59_v19 }
  0x86   :  { %v63_v22 = vmax.f32 %v60_v20, 0.0 }
  0x88   :  { %v64_v24 = vpack.c.bf16 %v63_v22, %v63_v22 }
  0x8a   :  { %320 = vmatmul.msk.bf16.vlgmr.msra.gmra.mxu1 %vm113_vm2, %v64_v24 }
  0x8b   :  { %v61_v25 = vpop.f32.mrf.mxu0 }
  0xa4   :  { %v187_v26 = vpop.f32.mrf.mxu2 }
  0xac   :  { %v189_v27 = vpop.f32.mrf.mxu2 }
 0x107   :  { %v126_v34 = vpop.f32.mrf.mxu1 }
 0x108   :  { %v188_v35 = vadd.f32 %v187_v26, %v126_v34 }
 0x10a   :  { %v192_v36 = vadd.f32 %v408_v33, %v188_v35 }
 0x10c   :  { %v193_v37 = vmax.f32 %v192_v36, 0.0 }
 0x10e   :  { %v194_v38 = vpack.c.bf16 %v193_v37, %v193_v37 }
 0x10f   :  { %v128_v39 = vpop.f32.mrf.mxu1 }
 0x110   :  { %369 = vmatmul.msk.bf16.vlgmr.msra.gmra.mxu3 %vm113_vm2, %v194_v38 }
 0x193   :  { %v240_v42 = vpop.f32.mrf.mxu3 }
 0x194   :  { %v241_v43 = vadd.f32 %v409_v41, %v240_v42 }
 0x196   :  { %v244_v44 = vmax.f32 %v241_v43, 0.0 }
 0x198   :  { %v245_v45 = vpack.c.bf16 %v244_v44, %v244_v44 }
 0x19a   :  { %386 = vmatmul.msk.bf16.vlgmr.msrb.gmra.mxu0 %vm113_vm2, %v245_v45 }
 0x19b   :  { %v242_v46 = vpop.f32.mrf.mxu3 }
 0x217   :  { %v294_v48 = vpop.f32.mrf.mxu0 }
 0x218   :  { %v295_v49 = vadd.f32 %v410_v47, %v294_v48 }
 0x21a   :  { %298 = vst [vmem:[%s557_s9] sm:$0xff] %v295_v49 }
 0x21f   :  { %v296_v50 = vpop.f32.mrf.mxu0 }

</bundles_post_ra>
